<compile_context>
chip_gen: v6e
topology: v6e:2x2x1
jax: 0.10.0
libtpu: 0.0.40
codegen_flags: <defaults>
</compile_context>

<pallas_src>
import functools

import numpy as np
import jax
import jax.numpy as jnp
from jax import lax
from jax.experimental import pallas as pl
from jax.experimental.pallas import tpu as pltpu


# ----------------------------------------------------------------------------
# Fused kernel: 1x1 conv projection + feature map + causal linear attention
# ----------------------------------------------------------------------------
def _fused_lin_attn_kernel(x_ref, wt_ref, b_ref, mask_ref, o_ref, s_ref,
                           *, n_heads, dk, dv, embed, approx_recip):
    t = pl.program_id(1)

    @pl.when(t == 0)
    def _():
        # reset the per-head running state S^T = sum_j v_j kf_j^T
        s_ref[...] = jnp.zeros_like(s_ref)

    # Fused 1x1 conv: (C_total, Cin) @ (Cin, blk) + bias.  Rows are
    # [Q channels | K channels | V channels]; columns are sequence positions.
    # Contraction dim (Cin) is small -> keep this matmul in f32.
    proj = (jnp.dot(wt_ref[...], x_ref[0], preferred_element_type=jnp.float32)
            + b_ref[...])

    # feature_fn(z) = elu(z) + 1  ==  z + 1 (z > 0), exp(z) (z <= 0);
    # applied once to the whole Q|K slab (one big vectorized where/exp, EUP).
    qk = proj[: 2 * embed, :]
    qk = jnp.where(qk > 0, qk + 1.0, jnp.exp(qk))
    qf_all = qk[:embed, :]
    kf_all = qk[embed:, :]
    v_all = proj[2 * embed:, :]

    mask = mask_ref[...]          # (blk, blk): mask[j, i] = 1.0 iff j <= i

    kc = None                     # running cumsum of feature(K) over heads
    for h in range(n_heads):
        qf = qf_all[h * dk:(h + 1) * dk, :]          # (dk, blk)  f32
        kf = kf_all[h * dk:(h + 1) * dk, :]          # (dk, blk)  f32
        v = v_all[h * dv:(h + 1) * dv, :]            # (dv, blk)  f32

        kc = kf if kc is None else kc + kf           # heads-axis cumsum (f32)

        # bf16 operands for the big (blk-contraction) MXU matmuls; f32 acc.
        qf_bf = qf.astype(jnp.bfloat16)
        kf_bf = kf.astype(jnp.bfloat16)
        v_bf = v.astype(jnp.bfloat16)

        # intra-block scores st[j, i] = kf_j . qf_i, causally masked (j <= i)
        st = lax.dot_general(kf_bf, qf_bf, (((0,), (0,)), ((), ())),
                             preferred_element_type=jnp.float32) * mask
        st_bf = st.astype(jnp.bfloat16)

        # numerator (dv, blk): cross-block carry (small, kept f32 for
        # accuracy) + intra-block contribution (bf16 operands, f32 acc)
        num = (jnp.dot(s_ref[h], qf, preferred_element_type=jnp.float32)
               + jnp.dot(v_bf, st_bf, preferred_element_type=jnp.float32))

        # denominator: 1 / (sum_d qf * cumsum_heads(kf) + 1e-10), f32
        den_in = jnp.sum(qf * kc, axis=0, keepdims=True) + 1e-10
        if approx_recip:
            den = pl.reciprocal(den_in, approx=True)
        else:
            den = 1.0 / den_in

        # direct, sublane-aligned, lane-dense per-head store (no concat)
        o_ref[0, h * dv:(h + 1) * dv, :] = (num * den).astype(o_ref.dtype)

        # carry S^T += sum_{j in block} v_j kf_j^T -> (dv, dk), kept in f32
        s_ref[h] += lax.dot_general(v_bf, kf_bf, (((1,), (1,)), ((), ())),
                                    preferred_element_type=jnp.float32)


# ----------------------------------------------------------------------------
# Wrapper helpers
# ----------------------------------------------------------------------------
def prepare_params(params):
    """Fold the two 1x1-conv projections into one resident weight/bias.

    Call once per module (outside the hot path) so the concat/transpose does
    not run on every forward.
    """
    wq, bq, wkv, bkv = params["wq"], params["bq"], params["wkv"], params["bkv"]
    embed = wq.shape[1]
    out_c = wkv.shape[1] - embed
    wt = jnp.concatenate([wq, wkv], axis=1).T            # (2*embed+out_c, Cin)
    b_all = jnp.concatenate([bq, bkv]).reshape(-1, 1)    # (2*embed+out_c, 1)
    return {"wt": wt, "b": b_all, "embed": embed, "out_c": out_c}


def _round_up(v, m):
    return ((v + m - 1) // m) * m


def _choose_block(L, target):
    """Sequence block: multiple of 128, <= min(target, 512), dividing padded L."""
    target = max(128, min(512, (target // 128) * 128))
    l_pad = _round_up(L, 128)
    best = 128
    b = 128
    while b <= min(target, l_pad):
        if l_pad % b == 0:
            best = b
        b += 128
    return best, _round_up(L, best)


# ----------------------------------------------------------------------------
# Full module forward: one pallas_call, zero XLA-side transposes
# ----------------------------------------------------------------------------
def linear_causal_attention(x, prepared, n_heads, *, block=128,
                            approx_recip=True):
    """x: (N, C, H, W) NCHW, like the PyTorch module; prepared = prepare_params(...)."""
    wt, b_all = prepared["wt"], prepared["b"]
    embed, out_c = prepared["embed"], prepared["out_c"]
    N, C, H, W = x.shape
    L = H * W
    c_total = wt.shape[0]
    assert c_total == 2 * embed + out_c
    assert embed % n_heads == 0 and out_c % n_heads == 0
    dk = embed // n_heads
    dv = out_c // n_heads

    blk, l_pad = _choose_block(L, block)

    # (N, C, H, W) -> (N, C, L): free reshape; channels stay on sublanes, the
    # long sequence axis lands on lanes.  End-pad L to a multiple of blk
    # (causally safe: padded positions only feed later, also-padded positions).
    x3 = x.reshape(N, C, L)
    if l_pad != L:
        x3 = jnp.pad(x3, ((0, 0), (0, 0), (0, l_pad - L)))

    # resident causal mask (rows = k position j, cols = q position i): j <= i
    mask = (jnp.arange(blk)[:, None] <= jnp.arange(blk)[None, :]).astype(jnp.float32)

    kernel = functools.partial(
        _fused_lin_attn_kernel, n_heads=n_heads, dk=dk, dv=dv, embed=embed,
        approx_recip=approx_recip)

    out = pl.pallas_call(
        kernel,
        out_shape=jax.ShapeDtypeStruct((N, out_c, l_pad), jnp.float32),
        grid_spec=pltpu.PrefetchScalarGridSpec(
            num_scalar_prefetch=0,
            grid=(N, l_pad // blk),
            in_specs=[
                pl.BlockSpec((1, C, blk), lambda n, t: (n, 0, t)),
                pl.BlockSpec((c_total, C), lambda n, t: (0, 0)),   # resident
                pl.BlockSpec((c_total, 1), lambda n, t: (0, 0)),   # resident
                pl.BlockSpec((blk, blk), lambda n, t: (0, 0)),     # resident mask
            ],
            out_specs=pl.BlockSpec((1, out_c, blk), lambda n, t: (n, 0, t)),
            scratch_shapes=[
                pltpu.VMEM((n_heads, dv, dk), jnp.float32),   # per-head S carry
            ],
        ),
        compiler_params=pltpu.CompilerParams(
            dimension_semantics=("parallel", "arbitrary"),
        ),
    )(x3, wt, b_all, mask)

    if l_pad != L:
        out = out[:, :, :L]
    # (N, out_c, L) -> (N, out_c, H, W): free reshape, channel = h*dv + d
    return out.reshape(N, out_c, H, W)


# ----------------------------------------------------------------------------
# Pure-JAX reference (mirrors the PyTorch forward, O(L^2) materialized)
# ----------------------------------------------------------------------------
def reference(x, params, n_heads):
    wq, bq, wkv, bkv = params["wq"], params["bq"], params["wkv"], params["bkv"]
    N, C, H, W = x.shape
    L = H * W
    embed = wq.shape[1]
    out_c = wkv.shape[1] - embed
    hi = jax.lax.Precision.HIGHEST

    xf = jnp.transpose(x, (0, 2, 3, 1)).reshape(N, L, C)
    Q = jnp.einsum("nlc,ce->nle", xf, wq, precision=hi) + bq
    KV = jnp.einsum("nlc,ce->nle", xf, wkv, precision=hi) + bkv
    K, V = KV[..., :embed], KV[..., embed:]

    def mh(t):
        d = t.shape[-1] // n_heads
        return t.reshape(N, L, n_heads, d).transpose(0, 2, 1, 3)

    Q, K, V = mh(Q), mh(K), mh(V)
    Q = jax.nn.elu(Q) + 1.0
    K = jax.nn.elu(K) + 1.0

    # the heads-axis cumsum quirk of the PyTorch module (dim=1 of N,h,L,d)
    den = 1.0 / (
        jnp.einsum("nlhi,nlhi->nlh", Q, jnp.cumsum(K, axis=1), precision=hi) + 1e-10
    )
    A = jnp.einsum("nhld,nhmd->nhlm", Q, K, precision=hi)
    A = A * jnp.tril(jnp.ones((L, L), jnp.float32))
    num = jnp.einsum("nhlm,nhmd->nhld", A, V, precision=hi)
    out = num * den[..., None]
    dv = out_c // n_heads
    return out.transpose(0, 1, 3, 2).reshape(N, n_heads * dv, H, W)


if __name__ == "__main__":
    # Small, deterministic setup: in_channels=16, n_heads=2, 16x16 spatial
    # -> L = 256, block = 128 exercises the cross-block S carry.
    N, C, H, W = 2, 16, 16, 16
    n_heads = 2
    embed_channels = C          # default: embed_channels = in_channels
    out_channels = C            # default: out_channels   = in_channels

    key = jax.random.PRNGKey(0)
    k1, k2, k3, k4, k5 = jax.random.split(key, 5)
    params = dict(
        wq=jax.random.normal(k1, (C, embed_channels), jnp.float32) * 0.3,
        bq=jax.random.normal(k2, (embed_channels,), jnp.float32) * 0.1,
        wkv=jax.random.normal(k3, (C, embed_channels + out_channels), jnp.float32) * 0.3,
        bkv=jax.random.normal(k4, (embed_channels + out_channels,), jnp.float32) * 0.1,
    )
    x = jax.random.normal(k5, (N, C, H, W), jnp.float32)

    prepared = prepare_params(params)   # hoisted weight concat/transpose
    out = jax.block_until_ready(
        linear_causal_attention(x, prepared, n_heads, block=128))
    ref = jax.block_until_ready(reference(x, params, n_heads))

    assert out.shape == (N, out_channels, H, W), out.shape
    out_np, ref_np = np.asarray(out), np.asarray(ref)
    rel_err = np.max(np.abs(out_np - ref_np)) / (np.max(np.abs(ref_np)) + 1e-6)
    assert np.isfinite(rel_err) and rel_err < 3e-2, f"rel_err={rel_err}"

    print("KERNEL_OK")
</pallas_src>

<mosaic_0001>
module attributes {stable_mosaic.version = 11 : i64} {
  func.func @_fused_lin_attn_kernel(%arg0: i32, %arg1: i32, %arg2: memref<1x16x128xf32, #tpu.memory_space<vmem>>, %arg3: memref<48x16xf32, #tpu.memory_space<vmem>>, %arg4: memref<48x1xf32, #tpu.memory_space<vmem>>, %arg5: memref<128x128xf32, #tpu.memory_space<vmem>>, %arg6: memref<1x16x128xf32, #tpu.memory_space<vmem>>, %arg7: memref<2x8x8xf32, #tpu.memory_space<vmem>>) attributes {dimension_semantics = [#tpu.dimension_semantics<parallel>, #tpu.dimension_semantics<arbitrary>], iteration_bounds = array<i64: 2, 2>, scalar_prefetch = 0 : i64, scratch_operands = 1 : i64, tpu.core_type = #tpu.core_type<tc>, window_params = [{transform_indices = @transform_0, window_bounds = array<i64: 1, 16, 128>}, {pipeline_mode = #tpu.pipeline_mode<synchronous>, transform_indices = @transform_1, window_bounds = array<i64: 48, 16>}, {pipeline_mode = #tpu.pipeline_mode<synchronous>, transform_indices = @transform_2, window_bounds = array<i64: 48, 1>}, {pipeline_mode = #tpu.pipeline_mode<synchronous>, transform_indices = @transform_3, window_bounds = array<i64: 128, 128>}, {transform_indices = @transform_4, window_bounds = array<i64: 1, 16, 128>}]} {
    %c0_i32 = arith.constant 0 : i32
    %0 = arith.cmpi eq, %arg1, %c0_i32 : i32
    %1 = arith.extui %0 : i1 to i32
    %c0_i32_0 = arith.constant 0 : i32
    %2 = arith.cmpi ne, %1, %c0_i32_0 : i32
    scf.if %2 {
      %cst_45 = arith.constant 0.000000e+00 : f32
      %86 = vector.broadcast %cst_45 : f32 to vector<2x8x8xf32>
      %c0_46 = arith.constant 0 : index
      %c0_47 = arith.constant 0 : index
      %c0_48 = arith.constant 0 : index
      %87 = vector.load %arg7[%c0_46, %c0_47, %c0_48] : memref<2x8x8xf32, #tpu.memory_space<vmem>>, vector<2x8x8xf32>
      tpu.vector_store %arg7[%c0_46, %c0_47, %c0_48], %86 {strides = array<i32>} : memref<2x8x8xf32, #tpu.memory_space<vmem>>, vector<2x8x8xf32>,
    } else {
    }
    %c0 = arith.constant 0 : index
    %c0_1 = arith.constant 0 : index
    %3 = vector.load %arg3[%c0, %c0_1] : memref<48x16xf32, #tpu.memory_space<vmem>>, vector<48x16xf32>
    %c0_2 = arith.constant 0 : index
    %c0_3 = arith.constant 0 : index
    %c0_4 = arith.constant 0 : index
    %4 = vector.load %arg2[%c0_2, %c0_3, %c0_4] : memref<1x16x128xf32, #tpu.memory_space<vmem>>, vector<1x16x128xf32>
    %5 = vector.shape_cast %4 : vector<1x16x128xf32> to vector<16x128xf32>
    %cst = arith.constant dense<0.000000e+00> : vector<48x128xf32>
    %6 = tpu.matmul %3, %5, %cst {dimension_numbers = #tpu.dot_dimension_numbers<[1], [0], [0], [1], [0, 0, 1, 1], [], []>} : vector<48x16xf32>, vector<16x128xf32>, vector<48x128xf32> -> vector<48x128xf32>
    %c0_5 = arith.constant 0 : index
    %c0_6 = arith.constant 0 : index
    %7 = vector.load %arg4[%c0_5, %c0_6] : memref<48x1xf32, #tpu.memory_space<vmem>>, vector<48x1xf32>
    %8 = vector.broadcast %7 : vector<48x1xf32> to vector<48x128xf32>
    %9 = arith.addf %6, %8 : vector<48x128xf32>
    %10 = vector.extract_strided_slice %9 {offsets = [0, 0], sizes = [32, 128], strides = [1, 1]} : vector<48x128xf32> to vector<32x128xf32>
    %cst_7 = arith.constant 0.000000e+00 : f32
    %11 = vector.broadcast %cst_7 : f32 to vector<32x128xf32>
    %12 = arith.cmpf ogt, %10, %11 : vector<32x128xf32>
    %cst_8 = arith.constant 1.000000e+00 : f32
    %13 = vector.broadcast %cst_8 : f32 to vector<32x128xf32>
    %14 = arith.addf %10, %13 : vector<32x128xf32>
    %15 = math.exp %10 : vector<32x128xf32>
    %16 = arith.select %12, %14, %15 : vector<32x128xi1>, vector<32x128xf32>
    %17 = vector.extract_strided_slice %16 {offsets = [0, 0], sizes = [16, 128], strides = [1, 1]} : vector<32x128xf32> to vector<16x128xf32>
    %18 = vector.extract_strided_slice %16 {offsets = [16, 0], sizes = [16, 128], strides = [1, 1]} : vector<32x128xf32> to vector<16x128xf32>
    %19 = vector.extract_strided_slice %9 {offsets = [32, 0], sizes = [16, 128], strides = [1, 1]} : vector<48x128xf32> to vector<16x128xf32>
    %c0_9 = arith.constant 0 : index
    %c0_10 = arith.constant 0 : index
    %20 = vector.load %arg5[%c0_9, %c0_10] : memref<128x128xf32, #tpu.memory_space<vmem>>, vector<128x128xf32>
    %21 = vector.extract_strided_slice %17 {offsets = [0, 0], sizes = [8, 128], strides = [1, 1]} : vector<16x128xf32> to vector<8x128xf32>
    %22 = vector.extract_strided_slice %18 {offsets = [0, 0], sizes = [8, 128], strides = [1, 1]} : vector<16x128xf32> to vector<8x128xf32>
    %23 = vector.extract_strided_slice %19 {offsets = [0, 0], sizes = [8, 128], strides = [1, 1]} : vector<16x128xf32> to vector<8x128xf32>
    %24 = arith.truncf %21 : vector<8x128xf32> to vector<8x128xbf16>
    %25 = arith.truncf %22 : vector<8x128xf32> to vector<8x128xbf16>
    %26 = arith.truncf %23 : vector<8x128xf32> to vector<8x128xbf16>
    %cst_11 = arith.constant dense<0.000000e+00> : vector<128x128xf32>
    %27 = tpu.matmul %25, %24, %cst_11 {dimension_numbers = #tpu.dot_dimension_numbers<[0], [0], [1], [1], [0, 1, 1, 1], [], []>} : vector<8x128xbf16>, vector<8x128xbf16>, vector<128x128xf32> -> vector<128x128xf32>
    %28 = arith.mulf %27, %20 : vector<128x128xf32>
    %29 = arith.truncf %28 : vector<128x128xf32> to vector<128x128xbf16>
    %c0_12 = arith.constant 0 : index
    %c0_13 = arith.constant 0 : index
    %c0_14 = arith.constant 0 : index
    %30 = vector.load %arg7[%c0_12, %c0_13, %c0_14] : memref<2x8x8xf32, #tpu.memory_space<vmem>>, vector<1x8x8xf32>
    %31 = vector.shape_cast %30 : vector<1x8x8xf32> to vector<8x8xf32>
    %cst_15 = arith.constant dense<0.000000e+00> : vector<8x128xf32>
    %32 = tpu.matmul %31, %21, %cst_15 {dimension_numbers = #tpu.dot_dimension_numbers<[1], [0], [0], [1], [0, 0, 1, 1], [], []>} : vector<8x8xf32>, vector<8x128xf32>, vector<8x128xf32> -> vector<8x128xf32>
    %cst_16 = arith.constant dense<0.000000e+00> : vector<8x128xf32>
    %33 = tpu.matmul %26, %29, %cst_16 {dimension_numbers = #tpu.dot_dimension_numbers<[1], [0], [0], [1], [0, 0, 1, 1], [], []>} : vector<8x128xbf16>, vector<128x128xbf16>, vector<8x128xf32> -> vector<8x128xf32>
    %34 = arith.addf %32, %33 : vector<8x128xf32>
    %35 = arith.mulf %21, %22 : vector<8x128xf32>
    %cst_17 = arith.constant dense<0.000000e+00> : vector<128xf32>
    %36 = vector.multi_reduction <add>, %35, %cst_17 [0] : vector<8x128xf32> to vector<128xf32>
    %37 = vector.shape_cast %36 : vector<128xf32> to vector<1x128xf32>
    %cst_18 = arith.constant 1.000000e-10 : f32
    %38 = vector.broadcast %cst_18 : f32 to vector<1x128xf32>
    %39 = arith.addf %37, %38 : vector<1x128xf32>
    %40 = tpu.reciprocal %39 {approx = true} : vector<1x128xf32> -> vector<1x128xf32>
    %41 = vector.broadcast %40 : vector<1x128xf32> to vector<8x128xf32>
    %42 = arith.mulf %34, %41 : vector<8x128xf32>
    %c0_19 = arith.constant 0 : index
    %c0_20 = arith.constant 0 : index
    %c0_21 = arith.constant 0 : index
    %43 = vector.load %arg6[%c0_19, %c0_20, %c0_21] : memref<1x16x128xf32, #tpu.memory_space<vmem>>, vector<1x8x128xf32>
    %44 = vector.shape_cast %43 : vector<1x8x128xf32> to vector<8x128xf32>
    %45 = vector.shape_cast %42 : vector<8x128xf32> to vector<1x8x128xf32>
    tpu.vector_store %arg6[%c0_19, %c0_20, %c0_21], %45 {strides = array<i32>} : memref<1x16x128xf32, #tpu.memory_space<vmem>>, vector<1x8x128xf32>,
    %c0_22 = arith.constant 0 : index
    %c0_23 = arith.constant 0 : index
    %c0_24 = arith.constant 0 : index
    %46 = vector.load %arg7[%c0_22, %c0_23, %c0_24] : memref<2x8x8xf32, #tpu.memory_space<vmem>>, vector<1x8x8xf32>
    %47 = vector.shape_cast %46 : vector<1x8x8xf32> to vector<8x8xf32>
    %cst_25 = arith.constant dense<0.000000e+00> : vector<8x8xf32>
    %48 = tpu.matmul %26, %25, %cst_25 {dimension_numbers = #tpu.dot_dimension_numbers<[1], [1], [0], [0], [0, 0, 1, 0], [], []>} : vector<8x128xbf16>, vector<8x128xbf16>, vector<8x8xf32> -> vector<8x8xf32>
    %49 = arith.addf %47, %48 : vector<8x8xf32>
    %c0_26 = arith.constant 0 : index
    %c0_27 = arith.constant 0 : index
    %c0_28 = arith.constant 0 : index
    %50 = vector.load %arg7[%c0_26, %c0_27, %c0_28] : memref<2x8x8xf32, #tpu.memory_space<vmem>>, vector<1x8x8xf32>
    %51 = vector.shape_cast %50 : vector<1x8x8xf32> to vector<8x8xf32>
    %52 = vector.shape_cast %49 : vector<8x8xf32> to vector<1x8x8xf32>
    tpu.vector_store %arg7[%c0_26, %c0_27, %c0_28], %52 {strides = array<i32>} : memref<2x8x8xf32, #tpu.memory_space<vmem>>, vector<1x8x8xf32>,
    %53 = vector.extract_strided_slice %17 {offsets = [8, 0], sizes = [8, 128], strides = [1, 1]} : vector<16x128xf32> to vector<8x128xf32>
    %54 = vector.extract_strided_slice %18 {offsets = [8, 0], sizes = [8, 128], strides = [1, 1]} : vector<16x128xf32> to vector<8x128xf32>
    %55 = vector.extract_strided_slice %19 {offsets = [8, 0], sizes = [8, 128], strides = [1, 1]} : vector<16x128xf32> to vector<8x128xf32>
    %56 = arith.addf %22, %54 : vector<8x128xf32>
    %57 = arith.truncf %53 : vector<8x128xf32> to vector<8x128xbf16>
    %58 = arith.truncf %54 : vector<8x128xf32> to vector<8x128xbf16>
    %59 = arith.truncf %55 : vector<8x128xf32> to vector<8x128xbf16>
    %cst_29 = arith.constant dense<0.000000e+00> : vector<128x128xf32>
    %60 = tpu.matmul %58, %57, %cst_29 {dimension_numbers = #tpu.dot_dimension_numbers<[0], [0], [1], [1], [0, 1, 1, 1], [], []>} : vector<8x128xbf16>, vector<8x128xbf16>, vector<128x128xf32> -> vector<128x128xf32>
    %61 = arith.mulf %60, %20 : vector<128x128xf32>
    %62 = arith.truncf %61 : vector<128x128xf32> to vector<128x128xbf16>
    %c1 = arith.constant 1 : index
    %c0_30 = arith.constant 0 : index
    %c0_31 = arith.constant 0 : index
    %63 = vector.load %arg7[%c1, %c0_30, %c0_31] : memref<2x8x8xf32, #tpu.memory_space<vmem>>, vector<1x8x8xf32>
    %64 = vector.shape_cast %63 : vector<1x8x8xf32> to vector<8x8xf32>
    %cst_32 = arith.constant dense<0.000000e+00> : vector<8x128xf32>
    %65 = tpu.matmul %64, %53, %cst_32 {dimension_numbers = #tpu.dot_dimension_numbers<[1], [0], [0], [1], [0, 0, 1, 1], [], []>} : vector<8x8xf32>, vector<8x128xf32>, vector<8x128xf32> -> vector<8x128xf32>
    %cst_33 = arith.constant dense<0.000000e+00> : vector<8x128xf32>
    %66 = tpu.matmul %59, %62, %cst_33 {dimension_numbers = #tpu.dot_dimension_numbers<[1], [0], [0], [1], [0, 0, 1, 1], [], []>} : vector<8x128xbf16>, vector<128x128xbf16>, vector<8x128xf32> -> vector<8x128xf32>
    %67 = arith.addf %65, %66 : vector<8x128xf32>
    %68 = arith.mulf %53, %56 : vector<8x128xf32>
    %cst_34 = arith.constant dense<0.000000e+00> : vector<128xf32>
    %69 = vector.multi_reduction <add>, %68, %cst_34 [0] : vector<8x128xf32> to vector<128xf32>
    %70 = vector.shape_cast %69 : vector<128xf32> to vector<1x128xf32>
    %cst_35 = arith.constant 1.000000e-10 : f32
    %71 = vector.broadcast %cst_35 : f32 to vector<1x128xf32>
    %72 = arith.addf %70, %71 : vector<1x128xf32>
    %73 = tpu.reciprocal %72 {approx = true} : vector<1x128xf32> -> vector<1x128xf32>
    %74 = vector.broadcast %73 : vector<1x128xf32> to vector<8x128xf32>
    %75 = arith.mulf %67, %74 : vector<8x128xf32>
    %c0_36 = arith.constant 0 : index
    %c8 = arith.constant 8 : index
    %c0_37 = arith.constant 0 : index
    %76 = vector.load %arg6[%c0_36, %c8, %c0_37] : memref<1x16x128xf32, #tpu.memory_space<vmem>>, vector<1x8x128xf32>
    %77 = vector.shape_cast %76 : vector<1x8x128xf32> to vector<8x128xf32>
    %78 = vector.shape_cast %75 : vector<8x128xf32> to vector<1x8x128xf32>
    tpu.vector_store %arg6[%c0_36, %c8, %c0_37], %78 {strides = array<i32>} : memref<1x16x128xf32, #tpu.memory_space<vmem>>, vector<1x8x128xf32>,
    %c1_38 = arith.constant 1 : index
    %c0_39 = arith.constant 0 : index
    %c0_40 = arith.constant 0 : index
    %79 = vector.load %arg7[%c1_38, %c0_39, %c0_40] : memref<2x8x8xf32, #tpu.memory_space<vmem>>, vector<1x8x8xf32>
    %80 = vector.shape_cast %79 : vector<1x8x8xf32> to vector<8x8xf32>
    %cst_41 = arith.constant dense<0.000000e+00> : vector<8x8xf32>
    %81 = tpu.matmul %59, %58, %cst_41 {dimension_numbers = #tpu.dot_dimension_numbers<[1], [1], [0], [0], [0, 0, 1, 0], [], []>} : vector<8x128xbf16>, vector<8x128xbf16>, vector<8x8xf32> -> vector<8x8xf32>
    %82 = arith.addf %80, %81 : vector<8x8xf32>
    %c1_42 = arith.constant 1 : index
    %c0_43 = arith.constant 0 : index
    %c0_44 = arith.constant 0 : index
    %83 = vector.load %arg7[%c1_42, %c0_43, %c0_44] : memref<2x8x8xf32, #tpu.memory_space<vmem>>, vector<1x8x8xf32>
    %84 = vector.shape_cast %83 : vector<1x8x8xf32> to vector<8x8xf32>
    %85 = vector.shape_cast %82 : vector<8x8xf32> to vector<1x8x8xf32>
    tpu.vector_store %arg7[%c1_42, %c0_43, %c0_44], %85 {strides = array<i32>} : memref<2x8x8xf32, #tpu.memory_space<vmem>>, vector<1x8x8xf32>,
    return
  }
  func.func @transform_0(%arg0: i32, %arg1: i32) -> (i32, i32, i32) {
    %c0_i32 = arith.constant 0 : i32
    %c0_i32_0 = arith.constant 0 : i32
    return %arg0, %c0_i32, %arg1 : i32, i32, i32
  }
  func.func @transform_1(%arg0: i32, %arg1: i32) -> (i32, i32) {
    %c0_i32 = arith.constant 0 : i32
    %c0_i32_0 = arith.constant 0 : i32
    %c0_i32_1 = arith.constant 0 : i32
    return %c0_i32, %c0_i32_0 : i32, i32
  }
  func.func @transform_2(%arg0: i32, %arg1: i32) -> (i32, i32) {
    %c0_i32 = arith.constant 0 : i32
    %c0_i32_0 = arith.constant 0 : i32
    %c0_i32_1 = arith.constant 0 : i32
    return %c0_i32, %c0_i32_0 : i32, i32
  }
  func.func @transform_3(%arg0: i32, %arg1: i32) -> (i32, i32) {
    %c0_i32 = arith.constant 0 : i32
    %c0_i32_0 = arith.constant 0 : i32
    %c0_i32_1 = arith.constant 0 : i32
    return %c0_i32, %c0_i32_0 : i32, i32
  }
  func.func @transform_4(%arg0: i32, %arg1: i32) -> (i32, i32, i32) {
    %c0_i32 = arith.constant 0 : i32
    %c0_i32_0 = arith.constant 0 : i32
    return %arg0, %c0_i32, %arg1 : i32, i32, i32
  }
}

</mosaic_0001>

<bundles_post_ra>
// kernel: tpu_custom_call.1
= control target key start
LH: loop header
LB: loop body
LE: loop exit
PB: predicated region body
PF: predicated region fallthrough
CT: control target
= control target key end

     0   :  { %9 = vsyncpa [#allocation5], 0  ;;  %s2137_s0 = inlined_call_operand.vmem [shape: f32[2,16,256], index: 0, kind: input, shape index: {}]   ;;  %s2138_s1 = inlined_call_operand.vmem [shape: f32[48,16], index: 1, kind: input, shape index: {}]   ;;  %s2139_s2 = inlined_call_operand.vmem [shape: f32[48,1], index: 2, kind: input, shape index: {}]   ;;  %s2140_s3 = inlined_call_operand.hbm [shape: f32[128,128], index: 3, kind: input, shape index: {}]   ;;  %s2141_s4 = inlined_call_operand.hbm [shape: f32[2,16,256], index: 4, kind: output, shape index: {}]  }
   0x1   :  { %10 = vsyncpa [#allocation6], 0 }
   0x2   :  { %12 = vsyncpa [#allocation6 + $0x1], 0  ;;  %s1726_s15 = smov 0   ;;  %s1728_s16 = smov 0  }
   0x3   :  { %s1730_s17 = smov 0   ;;  %s1732_s18 = smov 0  }
   0x4   :  { %s1734_s19 = smov 0   ;;  %s1736_s20 = smov 0  }
   0x5   :  { %s1738_s21 = smov 0   ;;  %s1740_s22 = smov 0  }
   0x6 LB: > { %s1254_s23 = sadd.s32 4294967295, %s1688_s22   ;;  %s1255_s24 = sadd.s32 4294967294, %s1688_s22   ;;  %s1688_s22 = sphi %s1740_s22, %s18_s22   ;;  %s1684_s21 = sphi %s1738_s21, %s2164_s21   ;;  %s1680_s20 = sphi %s1736_s20, %s2163_s20   ;;  %s1676_s19 = sphi %s1734_s19, %s2162_s19   ;;  %s1672_s18 = sphi %s1732_s18, %s2161_s18   ;;  %s1668_s17 = sphi %s1730_s17, %s2160_s17   ;;  %s1664_s16 = sphi %s1728_s16, %s2159_s16   ;;  %s1660_s15 = sphi %s1726_s15, %s2158_s15  }
   0x7   : > { %s27_s25 = sadd.s32 1, %s1680_s20  ;;  %s30_s26 = sadd.s32 1, %s1684_s21 }
   0x8   : > { %p28_p0 = scmp.ge.s32.totalorder %s27_s25, 2  ;;  %s39_s27 = sadd.s32 1, %s1668_s17 }
   0x9   : > { %p46_p1 = scmp.ne.s32.totalorder %s1668_s17, %s1664_s16  ;;  %p47_p2 = scmp.eq.s32.totalorder %s1688_s22, 0 }
   0xa   : > { %s2166_s25 = smov (%p28_p0, %s27_s25), 0  ;;  %s2168_s26 = smov (!%p28_p0, %s30_s26), %s1684_s21 }
   0xb   : > { %2145 = sst [smem:[#allocation10_spill]] %s2166_s25  ;;  %s35_s28 = ssub.s32 %s1680_s20, %s2166_s25 }
   0xc   : > { %p1779_p3 = por %p47_p2, %p46_p1  ;;  %p32_p4 = scmp.ge.s32.totalorder %s2168_s26, 2 }
   0xd   : > { %p141_p5 = scmp.eq.s32.totalorder %s1254_s23, 3  ;;  %p146_p6 = scmp.ne.s32.totalorder %s1664_s16, %s1660_s15 }
   0xe   : > { %p147_p7 = scmp.eq.s32.totalorder %s1255_s24, 3  ;;  %s2170_s26 = smov (%p32_p4, %s2168_s26), 0 }
   0xf   : > { %2147 = sst [smem:[#allocation11_spill]] %s2170_s26  ;;  %p1787_p8 = por %p141_p5, %p46_p1 }
  0x10   : > { %p1791_p9 = por %p147_p7, %p146_p6  ;;  %s34_s6 = ssub.s32 %s1684_s21, %s2170_s26 }
  0x11   : > { %s2148_s30 = scalar_select %p1787_p8, 1, 0 }
  0x12   : > { %s2149_s5 = scalar_select %p1791_p9, 1, 0 }
  0x13   : > { %p1256_p10 = scmp.ge.s32.totalorder %s1688_s22, 1  ;;  %s36_s7 = sor.u32 %s35_s28, %s34_s6 }
  0x14   : > { %p154_p11 = scmp.lt.s32.totalorder %s1688_s22, 5  ;;  %p37_p12 = scmp.eq.s32.totalorder %s36_s7, 0 }
  0x15   : > { %p1803_p0 = scmp.eq.s32.totalorder %s1254_s23, 0  ;;  %s1690_s11 = smov [#allocation4]  }
  0x16   : > { %p1799_p13 = pnand %p1256_p10, %p154_p11  ;;  %s172_s12 = sshll.u32 %s1690_s11, 4  ;;  %s173_s12 = int_to_ptr.vmem [resolvable:$true] %s172_s12 }
  0x17   : > { %s1808_s10 = scalar_select %p37_p12, %s1668_s17, %s39_s27  }
  0x18   : > { %p1467_p1 = pneg %p1799_p13  ;;  %s1577_s13 = scalar_lea.vmem %s173_s12, 2048 }
  0x19   : > { %2152 = sst [smem:[#allocation12_spill]] %s1808_s10  ;;  %p1578_p5 = scmp.ne.s32.totalorder %s173_s12, %s1577_s13 }
  0x1a   : > { %p1468_p2 = pnand %p1803_p0, %p1467_p1  ;;  %p1585_p10 = scmp.lt.s32.totalorder %s173_s12, %s173_s12 }
  0x1b   : > { %p1586_p11 = scmp.lt.s32.totalorder %s1577_s13, %s1577_s13 }
  0x1c   : > { %p1568_p4 = pneg %p1468_p2 }
  0x1d   : > { %p1587_p9 = por %p1586_p11, %p1585_p10 }
  0x1e   : > { %p1580_p6 = pnand %p1578_p5, %p1568_p4 }
  0x20   : > { %p1581_p7 = pneg %p1580_p6 }
  0x22   : > { %p1588_p8 = pnand %p1587_p9, %p1581_p7 }
  0x24   : > { %1591 = shalt.err (!%p1588_p8)
}
  0x25   : > { %s1691_s14 = smov 128   ;;  %s1692_s23 = smov 8  }
  0x26   : > { %1470 = dma.hbm_to_vmem [thread:$0]  (!%p1468_p2), %s2140_s3, 2048, %s173_s12, [#allocation5], %s1691_s14, %s1691_s14, %s1692_s23  }
  0x27   : > { %p1258_p12 = scmp.ge.s32.totalorder %s1688_s22, 4 }
  0x29   : > { %182 = sbr.rel (%p1258_p12) target bundleno = 53 (0x35), region = 28 }
  0x2e   : > { %185 = sbr.rel (!%p1779_p3) target bundleno = 53 (0x35), region = 32  ;;  %s187_s28 = sand.u32 (%p1779_p3), 1, %s1668_s17  }
  0x2f   : > { %s1260_s6 = sshll.u32 (%p1779_p3), %s1684_s21, 2  ;;  %s1259_s7 = sshll.u32 (%p1779_p3), %s187_s28, 4 }
  0x30   : > { %s191_s11 = sadd.s32 (%p1779_p3), %s1680_s20, %s1260_s6  ;;  %s189_s12 = scalar_lea.vmem (%p1779_p3), [#allocation3], %s1259_s7 }
  0x31   : > { %s1261_s13 = sshll.u32 (%p1779_p3), %s191_s11, 3 }
  0x32   : > { %s193_s10 = scalar_lea.vmem (%p1779_p3), %s2137_s0, %s1261_s13 }
  0x33   : > { %v224_v0 = vld [vmem:[%s193_s10] sm:$0xff]  ;;  %v226_v1 = vld [vmem:[%s193_s10 + $0x10] sm:$0xff] }
  0x34   : > { %225 = vst [vmem:[%s189_s12] sm:$0xff] %v224_v0  ;;  %227 = vst [vmem:[%s189_s12 + $0x8] sm:$0xff] %v226_v1 }
  0x35 PF: > { %236 = sbr.rel (%p1799_p13) target bundleno = 897 (0x381), region = 70  ;;  %s239_s29 = sand.u32 (!%p1799_p13), 1, %s1664_s16  }
  0x36   : > { %s1263_s14 = sshll.u32 (!%p1799_p13), %s239_s29, 4 }
  0x37   : > { %s241_s23 = scalar_lea.vmem (!%p1799_p13), [#allocation3], %s1263_s14 }
  0x3a   : > { %1651 = dma.done.wait (%p1803_p0), [#allocation5], 2048  }
  0x3b   : > { %1653 = vsyncadd (%p1803_p0), [#allocation5], 4294965248  ;;  %s1835_s25 = scalar_lea.vmem [#allocation7], %s1263_s14  ;;  %p1266_p3 = scmp.ne.s32.totalorder %s1672_s18, 0 }
  0x3d   : > { %272 = sbr.rel (%p1266_p3) target bundleno = 68 (0x44), region = 82 }
  0x42   : > { %vm273_vm0 = vcmask 64512   ;;  %v1693_v2 = vmov 0.0  }
  0x43   : > { %274 = vst.msk [vmem:[#allocation2] sm:$0xff] %vm273_vm0, %v1693_v2  ;;  %275 = vst.msk [vmem:[#allocation2 + $0x8] sm:$0xff] %vm273_vm0, %v1693_v2 }
  0x44 PF: > { %v283_v3 = vld [vmem:[%s241_s23 + $0x8] sm:$0xff]  ;;  %v282_v4 = vld [vmem:[%s241_s23] sm:$0xff]  ;;  %vm320_vm1 = vcmask 130048   ;;  %v1694_v7 = vmov 0   ;;  %vm514_vm3 = vcmask 1043456   ;;  %vm489_vm7 = vcmask 64512  }
  0x45   : > { %v276_v5 = vld [vmem:[%s2138_s1] sm:$0xff]  ;;  %1348 = vmatprep.subr.mxu0 %v283_v3  ;;  %v277_v6 = vld [vmem:[%s2138_s1 + $0x8] sm:$0xff]  ;;  %1553 = vset.pattern.permute.xlu1 %v1694_v7  ;;  %v286_v9 = vld [vmem:[%s2139_s2 + $0x10] sm:$0xff]  ;;  %vm1696_vm8 = vmmov 0   ;;  %s1292_s13 = sshll.u32 %s1676_s19, 2  ;;  %s1159_s23 = sshll.u32 %s1835_s25, 4  ;;  %s2080_s23 = int_to_ptr.vmem [resolvable:$true] %s1159_s23 }
  0x46   : > { %1352 = vmatprep.mubr.msk.f32.mxu0 %vm320_vm1, %v276_v5  ;;  %1349 = vmatpush3.msra.mxu0 %v283_v3  ;;  %v284_v8 = vld [vmem:[%s2139_s2] sm:$0xff]  ;;  %v278_v10 = vld [vmem:[%s2138_s1 + $0x10] sm:$0xff]  ;;  %v285_v11 = vld [vmem:[%s2139_s2 + $0x8] sm:$0xff]  ;;  %v1695_v5 = vmov 0.0   ;;  %s1156_s12 = sadd.s32 %s1672_s18, %s1292_s13  ;;  %s2086_s18 = scalar_lea.sflag [#allocation6], %s239_s29 }
  0x47   : > { %1350 = vmatprep.subr.mxu0 %v282_v4  ;;  %292 = vperm.xlu1 %1553, %v284_v8   ;;  %v279_v12 = vld [vmem:[%s2138_s1 + $0x18] sm:$0xff]  ;;  %v280_v14 = vld [vmem:[%s2138_s1 + $0x20] sm:$0xff]  ;;  %v281_v15 = vld [vmem:[%s2138_s1 + $0x28] sm:$0xff]  ;;  %s1293_s14 = sshll.u32 %s1156_s12, 7  ;;  %s1592_s19 = scalar_lea.vmem %s2080_s23, 256 }
  0x48   : > { %1351 = vmatpush3.msra.mxu0 %v282_v4  ;;  %1552 = vset.pattern.permute.xlu0 %v1694_v7  ;;  %v287_v13 = vld [vmem:[%s2139_s2 + $0x18] sm:$0xff]  ;;  %v289_v51 = vld [vmem:[%s2139_s2 + $0x28] sm:$0xff]  ;;  %v288_v52 = vld [vmem:[%s2139_s2 + $0x20] sm:$0xff]  ;;  %s2078_s9 = scalar_lea.hbm %s2141_s4, %s1293_s14  ;;  %p1593_p8 = scmp.ne.s32.totalorder %s2080_s23, %s1592_s19 }
  0x49   : > { %1353 = vmatmul.mubr.msk.f32.vlgmr.msra.gmra.mxu0 %vm320_vm1, %v277_v6  ;;  %302 = vperm.xlu0 %1552, %v286_v9   ;;  %p2153_p9 = scmp.ne.s32.totalorder %s2148_s30, 0  ;;  %s1697_s10 = smov [#allocation7]  }
  0x4a   : > { %1355 = vmatprep.mubr.msk.f32.mxu0 %vm320_vm1, %v278_v10  ;;  %1379 = vmatprep.subr.bf16.mxu0 %v1695_v5  ;;  %s1596_s24 = sshll.u32 %s1697_s10, 4  ;;  %s1597_s24 = int_to_ptr.vmem [resolvable:$false] %s1596_s24 }
  0x4b   : > { %297 = vperm.xlu1 %1553, %v285_v11   ;;  %p1594_p13 = pnand %p1593_p8, %p2153_p9  ;;  %s1598_s27 = scalar_lea.vmem %s1597_s24, 512 }
  0x4c   : > { %p1599_p1 = scmp.lt.s32.totalorder %s2080_s23, %s1597_s24  ;;  %p1600_p2 = scmp.lt.s32.totalorder %s1598_s27, %s1592_s19 }
  0x4d   : > { %1356 = vmatmul.mubr.msk.f32.gmra.mxu0 %vm320_vm1, %v279_v12  ;;  %307 = vperm.xlu0 %1552, %v287_v13   ;;  %p1595_p0 = pneg %p1594_p13 }
  0x4e   : > { %1358 = vmatprep.mubr.msk.f32.mxu0 %vm320_vm1, %v280_v14  ;;  %p1601_p4 = por %p1600_p2, %p1599_p1 }
  0x50   : > { %p1602_p5 = pnand %p1601_p4, %p1595_p0 }
  0x51   : > { %1359 = vmatmul.mubr.msk.f32.gmra.mxu0 %vm320_vm1, %v281_v15 }
  0x52   : > { %1395 = vmatprep.mubr.msk.bf16.mxu0 %vm1696_vm8, %v1695_v5 }
  0xc2   : > { %v293_v16 = vpop.permute.xlu1 %292 }
  0xc4   : > { %v303_v17 = vpop.permute.xlu0 %302 }
  0xc6   : > { %v298_v18 = vpop.permute.xlu1 %297 }
  0xc8   : > { %v308_v24 = vpop.permute.xlu0 %307 }
 0x109   : > { %v1354_v19 = vpop.f32.mrf.mxu0 }
 0x10a   : > { %v411_v20 = vadd.f32 %v1354_v19, %v298_v18  ;;  %v1935_v19 = vld [vmem:[#allocation4 + $0x70] sm:$0xff] }
 0x10b   : > { %v405_v21 = vpop.f32.mrf.mxu0 }
 0x10c   : > { %v444_v22 = vmul.f32 1.442695, %v411_v20  ;;  %v406_v23 = vadd.f32 %v405_v21, %v293_v16  ;;  %v439_v32 = vadd.f32 1.0, %v411_v20  ;;  %vm435_vm2 = vcmp.gt.f32.partialorder %v411_v20, 0.0  ;;  %v1937_v21 = vld [vmem:[#allocation4 + $0x78] sm:$0xff] }
 0x10d   : > { %v1357_v25 = vpop.f32.mrf.mxu0 }
 0x10e   : > { %1554 = vpow2.f32 %v444_v22  ;;  %v442_v26 = vmul.f32 1.442695, %v406_v23  ;;  %v421_v27 = vadd.f32 %v1357_v25, %v308_v24  ;;  %v438_v35 = vadd.f32 1.0, %v406_v23 }
 0x10f   : > { %v415_v28 = vpop.f32.mrf.mxu0  ;;  %vm434_vm4 = vcmp.gt.f32.partialorder %v406_v23, 0.0  ;;  %v1939_v23 = vld [vmem:[#allocation4 + $0x68] sm:$0xff] }
 0x110   : > { %1556 = vpow2.f32 %v442_v26  ;;  %v416_v29 = vadd.f32 %v415_v28, %v303_v17  ;;  %v448_v30 = vmul.f32 1.442695, %v421_v27  ;;  %v441_v39 = vadd.f32 1.0, %v421_v27  ;;  %v1943_v26 = vld [vmem:[#allocation4 + $0x60] sm:$0xff] }
 0x111   : > { %vm437_vm5 = vcmp.gt.f32.partialorder %v421_v27, 0.0 }
 0x112   : > { %v446_v31 = vmul.f32 1.442695, %v416_v29  ;;  %1558 = vpow2.f32 %v448_v30  ;;  %v440_v43 = vadd.f32 1.0, %v416_v29  ;;  %vm436_vm6 = vcmp.gt.f32.partialorder %v416_v29, 0.0  ;;  %v1946_v30 = vld [vmem:[#allocation4 + $0x58] sm:$0xff] }
 0x114   : > { %1560 = vpow2.f32 %v446_v31 }
 0x11b   : > { %v1555_v33 = vpop.eup %1554 }
 0x11c   : > { %v1874_v34 = vsel %vm435_vm2, %v439_v32, %v1555_v33  ;;  %v1951_v33 = vld [vmem:[#allocation4 + $0x50] sm:$0xff] }
 0x11d   : > { %v1557_v36 = vpop.eup %1556  ;;  %v808_v37 = vpack.c.bf16 %v1874_v34, %v1874_v34 }
 0x11e   : > { %v1878_v38 = vsel %vm434_vm4, %v438_v35, %v1557_v36 }
 0x11f   : > { %v470_v40 = vpack.c.bf16 %v1878_v38, %v1878_v38  ;;  %v852_v41 = vsel %vm514_vm3, %v808_v37, 0  ;;  %v1559_v42 = vpop.eup %1558 }
 0x120   : > { %v453_v46 = vsel %vm437_vm5, %v441_v39, %v1559_v42  ;;  %v1957_v39 = vld [vmem:[#allocation4 + $0x48] sm:$0xff]  ;;  %v1962_v42 = vld [vmem:[#allocation4 + $0x40] sm:$0xff] }
 0x121   : > { %v1561_v44 = vpop.eup %1560  ;;  %1459 = vmatprep.subr.msk.bf16.mxu1 %vm514_vm3, %v470_v40  ;;  %v516_v45 = vsel %vm514_vm3, %v470_v40, 0  ;;  %v1887_v48 = vpack.c.bf16 %v453_v46, %v453_v46 }
 0x122   : > { %v1885_v47 = vsel %vm436_vm6, %v440_v43, %v1561_v44  ;;  %1362 = vmatpush3.bf16.msra.mxu1 %v516_v45 }
 0x123   : > { %v1890_v49 = vadd.f32 %v453_v46, %v1885_v47  ;;  %1460 = vmatprep.subr.msk.bf16.mxu1 %vm514_vm3, %v808_v37  ;;  %v1895_v50 = vpack.c.bf16 %v1885_v47, %v1885_v47  ;;  %811 = vxpose.xlu1.c.b16.start.end [1/1] (short) %v1887_v48, 128  ;;  %v1968_v46 = vld [vmem:[#allocation4 + $0x38] sm:$0xff] }
 0x125   : > { %473 = vxpose.xlu0.c.b16.start.end [1/1] (short) %v1895_v50, 128 }
 0x143   : > { %317 = vperm.xlu1 %1553, %v289_v51  }
 0x14a   : > { %312 = vperm.xlu0 %1552, %v288_v52  }
 0x185   : > { %v819_v58 = vpop.trf.xlu1 }
 0x187   : > { %v481_v53 = vpop.trf.xlu0 }
 0x188   : > { %1363 = vmatprep.mubr.msk.bf16.mxu1 %vm489_vm7, %v481_v53  ;;  %v1973_v53 = vld [vmem:[#allocation4 + $0x30] sm:$0xff] }
 0x189   : > { %v820_v60 = vpop.trf.xlu1 }
 0x18b   : > { %v482_v54 = vpop.trf.xlu0 }
 0x18c   : > { %1364 = vmatmul.mubr.msk.bf16.vlgmr.msra.gmra.mxu1 %vm489_vm7, %v482_v54 }
 0x18d   : > { %1411 = vmatpush3.bf16.msra.mxu1 %v852_v41  ;;  %v821_v63 = vpop.trf.xlu1 }
 0x18e   : > { %1428 = vmatprep.subr.bf16.mxu1 %v1695_v5 }
 0x18f   : > { %v483_v55 = vpop.trf.xlu0 }
 0x190   : > { %1367 = vmatprep.mubr.msk.bf16.mxu1 %vm489_vm7, %v483_v55 }
 0x191   : > { %v822_v0 = vpop.trf.xlu1 }
 0x193   : > { %v484_v56 = vpop.trf.xlu0 }
 0x194   : > { %1368 = vmatmul.mubr.msk.bf16.gmra.mxu1 %vm489_vm7, %v484_v56 }
 0x195   : > { %v823_v1 = vpop.trf.xlu1 }
 0x197   : > { %v485_v57 = vpop.trf.xlu0 }
 0x198   : > { %1371 = vmatprep.mubr.msk.bf16.mxu1 %vm489_vm7, %v485_v57  ;;  %v1979_v57 = vld [vmem:[#allocation4 + $0x28] sm:$0xff] }
 0x199   : > { %v824_v2 = vpop.trf.xlu1 }
 0x19b   : > { %v486_v59 = vpop.trf.xlu0 }
 0x19c   : > { %1372 = vmatmul.mubr.msk.bf16.gmra.mxu1 %vm489_vm7, %v486_v59 }
 0x19d   : > { %v825_v3 = vpop.trf.xlu1 }
 0x19f   : > { %v487_v61 = vpop.trf.xlu0 }
 0x1a0   : > { %1375 = vmatprep.mubr.msk.bf16.mxu1 %vm489_vm7, %v487_v61 }
 0x1a1   : > { %v826_v4 = vpop.trf.xlu1 }
 0x1a3   : > { %v488_v62 = vpop.trf.xlu0 }
 0x1a4   : > { %1376 = vmatmul.mubr.msk.bf16.gmra.mxu1 %vm489_vm7, %v488_v62 }
 0x1a5   : > { %1412 = vmatprep.mubr.msk.bf16.mxu1 %vm489_vm7, %v819_v58 }
 0x1ac   : > { %1413 = vmatmul.mubr.msk.bf16.vlgmr.msra.gmra.mxu1 %vm489_vm7, %v820_v60  ;;  %v1984_v60 = vld [vmem:[#allocation4 + $0x20] sm:$0xff] }
 0x1ad   : > { %1416 = vmatprep.mubr.msk.bf16.mxu1 %vm489_vm7, %v821_v63 }
 0x1b4   : > { %1417 = vmatmul.mubr.msk.bf16.gmra.mxu1 %vm489_vm7, %v822_v0  ;;  %v1990_v0 = vld [vmem:[#allocation4 + $0x18] sm:$0xff] }
 0x1b5   : > { %1420 = vmatprep.mubr.msk.bf16.mxu1 %vm489_vm7, %v823_v1 }
 0x1bc   : > { %1421 = vmatmul.mubr.msk.bf16.gmra.mxu1 %vm489_vm7, %v824_v2 }
 0x1bd   : > { %1424 = vmatprep.mubr.msk.bf16.mxu1 %vm489_vm7, %v825_v3  ;;  %v1993_v3 = vld [vmem:[#allocation4 + $0x10] sm:$0xff] }
 0x1c4   : > { %1425 = vmatmul.mubr.msk.bf16.gmra.mxu1 %vm489_vm7, %v826_v4 }
 0x1c5   : > { %1444 = vmatprep.mubr.msk.bf16.mxu1 %vm1696_vm8, %v1695_v5 }
 0x24c   : > { %v1927_v6 = vpop.f32.mrf.mxu1 }
 0x24e   : > { %v1929_v7 = vpop.f32.mrf.mxu1 }
 0x250   : > { %v1931_v8 = vpop.f32.mrf.mxu1 }
 0x252   : > { %v1933_v9 = vpop.f32.mrf.mxu1 }
 0x254   : > { %v1369_v10 = vpop.f32.mrf.mxu1 }
 0x255   : > { %v621_v59 = vmul.f32 %v1369_v10, %v1973_v53  ;;  %v618_v10 = vmul.f32 %v1931_v8, %v1990_v0 }
 0x256   : > { %v568_v11 = vpop.f32.mrf.mxu1 }
 0x257   : > { %v619_v2 = vmul.f32 %v568_v11, %v1984_v60  ;;  %v2004_v11 = vld [vmem:[#allocation4] sm:$0xff] }
 0x258   : > { %v1370_v12 = vpop.f32.mrf.mxu1 }
 0x259   : > { %v622_v55 = vmul.f32 %v1370_v12, %v1968_v46 }
 0x25a   : > { %v571_v13 = vpop.f32.mrf.mxu1 }
 0x25b   : > { %v634_v62 = vpack.c.bf16 %v622_v55, %v621_v59  ;;  %v620_v63 = vmul.f32 %v571_v13, %v1979_v57  ;;  %v617_v13 = vmul.f32 %v1927_v6, %v1993_v3 }
 0x25c   : > { %v1373_v14 = vpop.f32.mrf.mxu1 }
 0x25d   : > { %v625_v41 = vmul.f32 %v1373_v14, %v1951_v33  ;;  %v633_v12 = vpack.c.bf16 %v620_v63, %v619_v2  ;;  %v1998_v14 = vld [vmem:[#allocation4 + $0x8] sm:$0xff]  ;;  %v1090_v2 = vmul.f32 %v1890_v49, %v1874_v34 }
 0x25e   : > { %v584_v15 = vpop.f32.mrf.mxu1  ;;  %v616_v8 = vmul.f32 %v1933_v9, %v1998_v14 }
 0x25f   : > { %v623_v52 = vmul.f32 %v584_v15, %v1962_v42 }
 0x260   : > { %v1374_v16 = vpop.f32.mrf.mxu1 }
 0x261   : > { %v626_v36 = vmul.f32 %v1374_v16, %v1946_v30  ;;  %v2000_v16 = vpop.f32.mrf.mxu0 }
 0x262   : > { %v587_v17 = vpop.f32.mrf.mxu1 }
 0x263   : > { %v636_v44 = vpack.c.bf16 %v626_v36, %v625_v41  ;;  %v624_v45 = vmul.f32 %v587_v17, %v1957_v39 }
 0x264   : > { %v1377_v18 = vpop.f32.mrf.mxu1 }
 0x265   : > { %v629_v24 = vmul.f32 %v1377_v18, %v1935_v19  ;;  %v635_v56 = vpack.c.bf16 %v624_v45, %v623_v52  ;;  %v425_v18 = vpop.f32.mrf.mxu0 }
 0x266   : > { %v600_v20 = vpop.f32.mrf.mxu1 }
 0x267   : > { %v627_v32 = vmul.f32 %v600_v20, %v1943_v26  ;;  %v313_v20 = vpop.permute.xlu0 %312 }
 0x268   : > { %v1378_v22 = vpop.f32.mrf.mxu1 }
 0x269   : > { %v630_v25 = vmul.f32 %v1378_v22, %v1937_v21  ;;  %v632_v22 = vpack.c.bf16 %v618_v10, %v617_v13 }
 0x26a   : > { %v603_v27 = vpop.f32.mrf.mxu1 }
 0x26b   : > { %v638_v28 = vpack.c.bf16 %v630_v25, %v629_v24  ;;  %v628_v29 = vmul.f32 %v603_v27, %v1939_v23  ;;  %v615_v25 = vmul.f32 %v1929_v7, %v2004_v11  ;;  %v426_v27 = vadd.f32 %v425_v18, %v313_v20 }
 0x26c   : > { %v1948_v31 = vpop.f32.mrf.mxu1 }
 0x26d   : > { %1380 = vmatpush3.bf16.msra.mxu0 %v638_v28  ;;  %v637_v37 = vpack.c.bf16 %v628_v29, %v627_v32  ;;  %v631_v6 = vpack.c.bf16 %v616_v8, %v615_v25 }
 0x26e   : > { %v1953_v35 = vpop.f32.mrf.mxu1  ;;  %1381 = vmatprep.subr.bf16.mxu0 %v1695_v5 }
 0x270   : > { %v1959_v40 = vpop.f32.mrf.mxu1 }
 0x271   : > { %1382 = vmatpush3.bf16.msra.mxu0 %v637_v37  ;;  %v472_v37 = vpack.c.bf16 %v426_v27, %v426_v27 }
 0x272   : > { %v1964_v43 = vpop.f32.mrf.mxu1  ;;  %1383 = vmatprep.subr.bf16.mxu0 %v1695_v5 }
 0x273   : > { %v952_v59 = vmul.f32 %v1964_v43, %v1998_v14  ;;  %v753_v43 = vmul.f32 %v1885_v47, %v1878_v38 }
 0x274   : > { %v1970_v51 = vpop.f32.mrf.mxu1 }
 0x275   : > { %1384 = vmatpush3.bf16.msra.mxu0 %v636_v44 }
 0x276   : > { %v1975_v54 = vpop.f32.mrf.mxu1  ;;  %1385 = vmatprep.subr.bf16.mxu0 %v1695_v5 }
 0x278   : > { %v1981_v58 = vpop.f32.mrf.mxu1 }
 0x279   : > { %1386 = vmatpush3.bf16.msra.mxu0 %v635_v56  ;;  %v955_v56 = vmul.f32 %v1975_v54, %v1984_v60  ;;  %v318_v54 = vpop.permute.xlu1 %317 }
 0x27a   : > { %v1986_v61 = vpop.f32.mrf.mxu1  ;;  %1387 = vmatprep.subr.bf16.mxu0 %v1695_v5  ;;  %v431_v60 = vadd.f32 %v2000_v16, %v318_v54 }
 0x27c   : > { %v1422_v1 = vpop.f32.mrf.mxu1 }
 0x27d   : > { %1388 = vmatpush3.bf16.msra.mxu0 %v634_v62  ;;  %v961_v45 = vmul.f32 %v1422_v1, %v1951_v33  ;;  %v754_v62 = vrot.slane %v753_v43, 4 }
 0x27e   : > { %v920_v4 = vpop.f32.mrf.mxu1  ;;  %1389 = vmatprep.subr.bf16.mxu0 %v1695_v5 }
 0x27f   : > { %v959_v55 = vmul.f32 %v920_v4, %v1962_v42  ;;  %v1091_v4 = vrot.slane %v1090_v2, 4 }
 0x280   : > { %v1423_v15 = vpop.f32.mrf.mxu1 }
 0x281   : > { %1390 = vmatpush3.bf16.msra.mxu0 %v633_v12 }
 0x282   : > { %v923_v17 = vpop.f32.mrf.mxu1  ;;  %1391 = vmatprep.subr.bf16.mxu0 %v1695_v5 }
 0x283   : > { %v960_v52 = vmul.f32 %v923_v17, %v1957_v39  ;;  %v957_v39 = vmul.f32 %v1970_v51, %v1973_v53  ;;  %v953_v53 = vmul.f32 %v1948_v31, %v1993_v3 }
 0x284   : > { %v1426_v24 = vpop.f32.mrf.mxu1 }
 0x285   : > { %1392 = vmatpush3.bf16.msra.mxu0 %v632_v22  ;;  %v965_v32 = vmul.f32 %v1426_v24, %v1935_v19  ;;  %v962_v19 = vmul.f32 %v1423_v15, %v1946_v30  ;;  %v958_v30 = vmul.f32 %v1981_v58, %v1968_v46  ;;  %v971_v33 = vpack.c.bf16 %v960_v52, %v959_v55 }
 0x286   : > { %v936_v28 = vpop.f32.mrf.mxu1  ;;  %1393 = vmatprep.subr.bf16.mxu0 %v1695_v5  ;;  %v954_v46 = vmul.f32 %v1959_v40, %v1990_v0  ;;  %v951_v40 = vmul.f32 %v1953_v35, %v2004_v11  ;;  %v755_v35 = vadd.f32 %v754_v62, %v753_v43 }
 0x287   : > { %v963_v7 = vmul.f32 %v936_v28, %v1943_v26  ;;  %v972_v26 = vpack.c.bf16 %v962_v19, %v961_v45  ;;  %v970_v42 = vpack.c.bf16 %v958_v30, %v957_v39 }
 0x288   : > { %v1427_v29 = vpop.f32.mrf.mxu1  ;;  %v968_v58 = vpack.c.bf16 %v954_v46, %v953_v53  ;;  %v967_v31 = vpack.c.bf16 %v952_v59, %v951_v40  ;;  %v756_v63 = vrot.slane %v755_v35, 2 }
 0x289   : > { %v966_v36 = vmul.f32 %v1427_v29, %v1937_v21  ;;  %1394 = vmatpush3.bf16.msra.mxu0 %v631_v6 }
 0x28a   : > { %v939_v41 = vpop.f32.mrf.mxu1  ;;  %1399 = vmatprep.subr.mxu0 %v1695_v5 }
 0x28b   : > { %v974_v9 = vpack.c.bf16 %v966_v36, %v965_v32  ;;  %v964_v44 = vmul.f32 %v939_v41, %v1939_v23  ;;  %v2024_v23 = vld [vmem:[#allocation2] sm:$0xff] }
 0x28c   : > { %1396 = vmatmul.mubr.bf16.vlgmr.msra.gmra.mxu0 %v472_v37 }
 0x28d   : > { %1400 = vmatpush3.msra.mxu0 %v1878_v38  ;;  %1429 = vmatpush3.bf16.msra.mxu1 %v974_v9  ;;  %v973_v21 = vpack.c.bf16 %v964_v44, %v963_v7 }
 0x28e   : > { %1430 = vmatprep.subr.bf16.mxu1 %v1695_v5  ;;  %1401 = vmatprep.mubr.msk.f32.mxu0 %vm1696_vm8, %v1695_v5 }
 0x28f   : > { %1404 = vmatprep.subr.bf16.mxu0 %v1695_v5 }
 0x291   : > { %1431 = vmatpush3.bf16.msra.mxu1 %v973_v21 }
 0x292   : > { %1432 = vmatprep.subr.bf16.mxu1 %v1695_v5 }
 0x294   : > { %1402 = vmatmul.mubr.msk.f32.vlgmr.msra.gmra.mxu0 %vm489_vm7, %v2024_v23 }
 0x295   : > { %1405 = vmatpush3.bf16.xpose.msra.mxu0 %v1895_v50  ;;  %1433 = vmatpush3.bf16.msra.mxu1 %v972_v26  ;;  %v956_v50 = vmul.f32 %v1986_v61, %v1979_v57  ;;  %v976_v57 = vld [vmem:[#allocation2 + $0x8] sm:$0xff]  ;;  %v810_v61 = vpack.c.bf16 %v431_v60, %v431_v60 }
 0x296   : > { %1434 = vmatprep.subr.bf16.mxu1 %v1695_v5  ;;  %1406 = vmatprep.mubr.msk.bf16.mxu0 %vm1696_vm8, %v1695_v5 }
 0x297   : > { %1448 = vmatprep.subr.mxu0 %v1695_v5  ;;  %v969_v51 = vpack.c.bf16 %v956_v50, %v955_v56 }
 0x299   : > { %1435 = vmatpush3.bf16.msra.mxu1 %v971_v33 }
 0x29a   : > { %1436 = vmatprep.subr.bf16.mxu1 %v1695_v5 }
 0x29c   : > { %1407 = vmatmul.mubr.bf16.vlgmr.msra.gmra.mxu0 %v472_v37 }
 0x29d   : > { %1449 = vmatpush3.msra.mxu0 %v1874_v34  ;;  %1437 = vmatpush3.bf16.msra.mxu1 %v970_v42 }
 0x29e   : > { %1438 = vmatprep.subr.bf16.mxu1 %v1695_v5  ;;  %1450 = vmatprep.mubr.msk.f32.mxu0 %vm1696_vm8, %v1695_v5 }
 0x29f   : > { %1453 = vmatprep.subr.bf16.mxu0 %v1695_v5 }
 0x2a1   : > { %1439 = vmatpush3.bf16.msra.mxu1 %v969_v51 }
 0x2a2   : > { %1440 = vmatprep.subr.bf16.mxu1 %v1695_v5 }
 0x2a4   : > { %1451 = vmatmul.mubr.msk.f32.vlgmr.msra.gmra.mxu0 %vm489_vm7, %v976_v57 }
 0x2a5   : > { %1454 = vmatpush3.bf16.xpose.msra.mxu0 %v1887_v48  ;;  %1441 = vmatpush3.bf16.msra.mxu1 %v968_v58  ;;  %v757_v48 = vadd.f32 %v756_v63, %v755_v35 }
 0x2a6   : > { %1442 = vmatprep.subr.bf16.mxu1 %v1695_v5  ;;  %1455 = vmatprep.mubr.msk.bf16.mxu0 %vm1696_vm8, %v1695_v5  ;;  %v1092_v5 = vadd.f32 %v1091_v4, %v1090_v2 }
 0x2a7   : > { %v758_v0 = vrot.slane %v757_v48, 1 }
 0x2a8   : > { %v1093_v12 = vrot.slane %v1092_v5, 2 }
 0x2a9   : > { %1443 = vmatpush3.bf16.msra.mxu1 %v967_v31  ;;  %v759_v1 = vadd.f32 %v758_v0, %v757_v48 }
 0x2aa   : > { %v1094_v16 = vadd.f32 %v1093_v12, %v1092_v5 }
 0x2ab   : > { %v760_v3 = vadd.f32 1e-10, %v759_v1 }
 0x2ac   : > { %1456 = vmatmul.mubr.bf16.vlgmr.msra.gmra.mxu0 %v810_v61  ;;  %1445 = vmatmul.mubr.bf16.vlgmr.msra.gmra.mxu1 %v810_v61  ;;  %v1095_v13 = vrot.slane %v1094_v16, 1 }
 0x2ad   : > { %1562 = vrcp.f32 %v760_v3 }
 0x2ae   : > { %v1096_v34 = vadd.f32 %v1095_v13, %v1094_v16 }
 0x2b0   : > { %v1097_v22 = vadd.f32 1e-10, %v1096_v34 }
 0x2b2   : > { %1564 = vrcp.f32 %v1097_v22 }
 0x2ba   : > { %v1563_v17 = vpop.eup %1562 }
 0x2bf   : > { %v1565_v41 = vpop.eup %1564 }
 0x34c   : > { %v674_v10 = vpop.f32.mrf.mxu0 }
 0x34e   : > { %v1397_v14 = vpop.f32.mrf.mxu0 }
 0x350   : > { %v677_v15 = vpop.f32.mrf.mxu0 }
 0x352   : > { %v1398_v38 = vpop.f32.mrf.mxu0 }
 0x354   : > { %v749_v47 = vpop.f32.mrf.mxu0 }
 0x355   : > { %v750_v11 = vadd.f32 %v749_v47, %v674_v10 }
 0x356   : > { %v1403_v18 = vpop.f32.mrf.mxu0 }
 0x357   : > { %v762_v20 = vmul.f32 %v1563_v17, %v750_v11 }
 0x359   : > { %763 = vst [vmem:[%s1835_s25] sm:$0xff] %v762_v20 }
 0x35c   : > { %v799_v49 = vpop.f32.mrf.mxu0 }
 0x35d   : > { %v805_v8 = vadd.f32 %v799_v49, %v2024_v23 }
 0x35e   : > { %v1408_v24 = vpop.f32.mrf.mxu0 }
 0x35f   : > { %806 = vst.msk [vmem:[#allocation2] sm:$0xff] %vm489_vm7, %v805_v8 }
 0x360   : > { %v802_v25 = vpop.f32.mrf.mxu0 }
 0x362   : > { %v1409_v27 = vpop.f32.mrf.mxu0 }
 0x364   : > { %v1086_v28 = vpop.f32.mrf.mxu0 }
 0x366   : > { %v1452_v6 = vpop.f32.mrf.mxu0 }
 0x36c   : > { %v1136_v29 = vpop.f32.mrf.mxu0  ;;  %v1011_v32 = vpop.f32.mrf.mxu1 }
 0x36d   : > { %v1142_v36 = vadd.f32 %v1136_v29, %v976_v57  ;;  %v1087_v37 = vadd.f32 %v1086_v28, %v1011_v32 }
 0x36e   : > { %v1457_v9 = vpop.f32.mrf.mxu0  ;;  %v1446_v44 = vpop.f32.mrf.mxu1 }
 0x36f   : > { %1143 = vst.msk [vmem:[#allocation2 + $0x8] sm:$0xff] %vm489_vm7, %v1142_v36  ;;  %v1099_v7 = vmul.f32 %v1565_v41, %v1087_v37 }
 0x370   : > { %v1139_v19 = vpop.f32.mrf.mxu0  ;;  %v1014_v21 = vpop.f32.mrf.mxu1 }
 0x371   : > { %1100 = vst [vmem:[%s1835_s25 + $0x8] sm:$0xff] %v1099_v7 }
 0x372   : > { %v1458_v45 = vpop.f32.mrf.mxu0  ;;  %v1447_v23 = vpop.f32.mrf.mxu1 }
 0x373   : > { %1605 = shalt.err (!%p1602_p5)
}
 0x374   : > { %s1606_s29 = scalar_lea.hbm %s2078_s9, 256  ;;  %s1610_s6 = scalar_lea.hbm %s2141_s4, 1024 }
 0x375   : > { %p1607_p6 = scmp.ne.s32.totalorder %s2078_s9, %s1606_s29  ;;  %p1611_p11 = scmp.lt.s32.totalorder %s2078_s9, %s2141_s4 }
 0x376   : > { %p1612_p12 = scmp.lt.s32.totalorder %s1610_s6, %s1606_s29 }
 0x377   : > { %p1608_p7 = pnand %p1607_p6, %p2153_p9 }
 0x378   : > { %p1613_p3 = por %p1612_p12, %p1611_p11 }
 0x379   : > { %p1609_p10 = pneg %p1608_p7 }
 0x37b   : > { %p1614_p8 = pnand %p1613_p3, %p1609_p10 }
 0x37d   : > { %1617 = shalt.err (!%p1614_p8)
}
 0x37e   : > { %s1698_s13 = smov 128   ;;  %s1699_s12 = smov 256  }
 0x37f   : > { %s1700_s14 = smov 8  }
 0x380   : > { %1465 = dma.vmem_to_hbm [thread:$0]  (%p2153_p9), %s2080_s23, 256, %s2078_s9, %s2086_s18, %s1698_s13, %s1699_s12, %s1700_s14  }
 0x381 PF: > { %p1477_p13 = scmp.ge.s32.totalorder %s1688_s22, 2  ;;  %s1174_s26 = sand.u32 1, %s1660_s15  }
 0x382   : > { %p2154_p0 = scmp.ne.s32.totalorder %s2149_s5, 0  ;;  %s1175_s8 = scalar_lea.sflag [#allocation6], %s1174_s26 }
 0x384   : > { %p1472_p1 = pnand %p1477_p13, %p2154_p0 }
 0x386   : > { %p1473_p2 = pneg %p1472_p1 }
 0x388   : > { %1655 = dma.done.wait (%p1473_p2), %s1175_s8, 256  }
 0x389   : > { %1657 = vsyncadd (%p1473_p2), %s1175_s8, 4294967040  ;;  %s18_s22 = sadd.s32 1, %s1688_s22   ;;  %s2155_s19 = sld [smem:[#allocation12_spill]] }
 0x38a   : > { %p15_p4 = scmp.ge.s32.totalorder %s18_s22, 6   ;;  %s2156_s30 = sld [smem:[#allocation10_spill]] }
 0x38b   : > { %s2157_s23 = sld [smem:[#allocation11_spill]]  ;;  %s2158_s15 = smov %s1664_s16 }
 0x38c   : > { %s2159_s16 = smov %s1668_s17  ;;  %s2161_s18 = smov %s1680_s20 }
 0x38d   :  { %17 = sbr.rel (!%p15_p4) target bundleno = 6 (0x6), region = 124 }
 0x38f   : > { %s2160_s17 = smov %s2155_s19  ;;  %s2162_s19 = smov %s1684_s21 }
 0x390   : > { %s2163_s20 = smov %s2156_s30 }
 0x391   : > { %s2164_s21 = smov %s2157_s23 }
 0x392   :  { %1180 = vsyncpa [#allocation5], 1 }
 0x393   :  { %1182 = vsyncpa [#allocation5 + $0x1], 1 }
 0x394   :  { %1183 = vsyncpa [#allocation6], 1 }
 0x395   :  { %1185 = vsyncpa [#allocation6 + $0x1], 1 }

</bundles_post_ra>
